<compile_context>
chip_gen: v5e
topology: v5e:2x2
jax: 0.10.0
libtpu: 0.0.40
codegen_flags: <defaults>
</compile_context>

<pallas_src>
import math
from functools import partial

import jax
import jax.numpy as jnp
from jax.experimental import pallas as pl
from jax.experimental.pallas import tpu as pltpu


def _hbm_copy_kernel(x_hbm, o_hbm, sems, *, num_chunks):
    """Identity copy via direct HBM->HBM DMAs (no VMEM staging).

    x_hbm / o_hbm have shape (num_chunks, chunk_len); each DMA moves one fully
    contiguous row.  All copies are started first (kept in flight together to
    saturate HBM bandwidth), then waited on.
    """
    copies = []
    for i in range(num_chunks):
        cp = pltpu.make_async_copy(
            x_hbm.at[pl.ds(i, 1), :],
            o_hbm.at[pl.ds(i, 1), :],
            sems.at[i],
        )
        cp.start()
        copies.append(cp)
    for cp in copies:
        cp.wait()


def _pick_num_chunks(n_elem, itemsize, *, max_chunks=8, min_chunk_bytes=1 << 16):
    """Largest k <= max_chunks dividing n_elem, with each chunk >= 64 KiB.

    4-8 concurrent DMAs are enough to saturate HBM on every generation; tiny
    arrays collapse to a single DMA so we don't pay 8x issue overhead for
    nothing.  Always returns >= 1 (k = 1 handles primes / awkward counts).
    """
    limit = max(1, min(max_chunks, (n_elem * itemsize) // min_chunk_bytes))
    for k in range(limit, 0, -1):
        if n_elem % k == 0:
            return k
    return 1


def _hbm_identity_copy(flat2d, num_chunks):
    return pl.pallas_call(
        partial(_hbm_copy_kernel, num_chunks=num_chunks),
        out_shape=jax.ShapeDtypeStruct(flat2d.shape, flat2d.dtype),
        in_specs=[pl.BlockSpec(memory_space=pl.ANY)],
        out_specs=pl.BlockSpec(memory_space=pl.ANY),
        scratch_shapes=[pltpu.SemaphoreType.DMA((num_chunks,))],
    )(flat2d)


@partial(jax.jit, static_argnames=("shape",))
def _reshape_copy(x, shape):
    n_elem = x.size
    if n_elem == 0:
        return jnp.reshape(x, shape)
    itemsize = jnp.dtype(x.dtype).itemsize
    k = _pick_num_chunks(n_elem, itemsize)
    flat = x.reshape(k, n_elem // k)      # metadata-only (bitcast) under jit
    out = _hbm_identity_copy(flat, k)     # the only HBM traffic: read N + write N
    return out.reshape(shape)             # metadata-only (bitcast) under jit


def pallas_reshape(x, shape):
    """Pallas equivalent of torch.Tensor.view(shape) for contiguous inputs."""
    shape = tuple(int(s) for s in shape)
    n_elem = x.size
    if -1 in shape:
        if shape.count(-1) > 1:
            raise ValueError("only one dimension can be inferred (-1)")
        known = math.prod(s for s in shape if s != -1)
        if known == 0 or n_elem % known:
            raise ValueError(f"cannot view array of {n_elem} elements as {shape}")
        shape = tuple(n_elem // known if s == -1 else s for s in shape)
    if math.prod(shape) != n_elem:
        raise ValueError(f"cannot view array of {n_elem} elements as {shape}")
    return _reshape_copy(x, shape)


class Reshape:
    """JAX/Pallas mirror of the PyTorch Reshape module (forward = x.view(shape))."""

    def __init__(self, *args):
        self.shape = args

    def __call__(self, x):
        return pallas_reshape(x, self.shape)


if __name__ == "__main__":
    key = jax.random.PRNGKey(0)

    # CNN-style activation (NCHW): N=2, C=4, H=W=16 — flattened before the head.
    x = jax.random.normal(key, (2, 4, 16, 16), dtype=jnp.float32)
    y = Reshape(2, 4 * 16 * 16)(x)
    jax.block_until_ready(y)
    ref = jnp.reshape(x, (2, 1024))
    assert y.shape == (2, 1024) and y.dtype == x.dtype
    assert bool(jnp.array_equal(y, ref))

    # -1 inference path, like Reshape(-1, 1024).
    y2 = Reshape(-1, 4 * 16 * 16)(x)
    jax.block_until_ready(y2)
    assert bool(jnp.array_equal(y2, ref))

    # Larger activation exercising the multi-DMA (8 concurrent chunks) path.
    xb = jax.random.normal(jax.random.PRNGKey(1), (8, 16, 32, 32), dtype=jnp.float32)
    yb = Reshape(8, 16 * 32 * 32)(xb)
    jax.block_until_ready(yb)
    assert bool(jnp.array_equal(yb, jnp.reshape(xb, (8, 16 * 32 * 32))))

    # Awkward element count (3*5*7 = 105): handled by the same DMA path,
    # no padded-VMEM fallback and no jnp.reshape escape hatch needed.
    xo = jax.random.normal(jax.random.PRNGKey(2), (3, 5, 7), dtype=jnp.float32)
    yo = Reshape(105)(xo)
    jax.block_until_ready(yo)
    assert yo.shape == (105,)
    assert bool(jnp.array_equal(yo, jnp.reshape(xo, (105,))))

    # bf16 path (DMA is dtype-agnostic; no sublane/packing constraints here).
    xh = x.astype(jnp.bfloat16)
    yh = Reshape(2, 1024)(xh)
    jax.block_until_ready(yh)
    assert bool(jnp.array_equal(yh, jnp.reshape(xh, (2, 1024))))

    print("KERNEL_OK")
</pallas_src>

<mosaic_0001>
module attributes {stable_mosaic.version = 11 : i64} {
  func.func @_hbm_copy_kernel(%arg0: memref<1x2048xf32, #tpu.memory_space<any>>, %arg1: memref<1x2048xf32, #tpu.memory_space<any>>, %arg2: memref<1x!tpu.dma_semaphore, #tpu.memory_space<semaphore_mem>>) attributes {dimension_semantics = [], scalar_prefetch = 0 : i64, scratch_operands = 1 : i64, tpu.core_type = #tpu.core_type<tc>} {
    %c0_i32 = arith.constant 0 : i32
    %c0_i32_0 = arith.constant 0 : i32
    %c0_i32_1 = arith.constant 0 : i32
    %0 = tpu.memref_slice %arg0[%c0_i32_0, %c0_i32_1] : memref<1x2048xf32, #tpu.memory_space<any>> -> memref<1x2048xf32, #tpu.memory_space<any>>
    %c0_i32_2 = arith.constant 0 : i32
    %c0_i32_3 = arith.constant 0 : i32
    %1 = tpu.memref_slice %arg1[%c0_i32_2, %c0_i32_3] : memref<1x2048xf32, #tpu.memory_space<any>> -> memref<1x2048xf32, #tpu.memory_space<any>>
    %2 = tpu.memref_slice %arg2[%c0_i32] : memref<1x!tpu.dma_semaphore, #tpu.memory_space<semaphore_mem>> -> memref<1x!tpu.dma_semaphore, #tpu.memory_space<semaphore_mem>>
    %3 = tpu.memref_squeeze %2 : memref<1x!tpu.dma_semaphore, #tpu.memory_space<semaphore_mem>> -> memref<!tpu.dma_semaphore, #tpu.memory_space<semaphore_mem>>
    tpu.enqueue_dma source(%0 : memref<1x2048xf32, #tpu.memory_space<any>>) target(%1 : memref<1x2048xf32, #tpu.memory_space<any>>) target_semaphore(%3 : memref<!tpu.dma_semaphore, #tpu.memory_space<semaphore_mem>>)
    %c0_i32_4 = arith.constant 0 : i32
    %c0_i32_5 = arith.constant 0 : i32
    %c0_i32_6 = arith.constant 0 : i32
    %4 = tpu.memref_slice %arg0[%c0_i32_5, %c0_i32_6] : memref<1x2048xf32, #tpu.memory_space<any>> -> memref<1x2048xf32, #tpu.memory_space<any>>
    %c0_i32_7 = arith.constant 0 : i32
    %c0_i32_8 = arith.constant 0 : i32
    %5 = tpu.memref_slice %arg1[%c0_i32_7, %c0_i32_8] : memref<1x2048xf32, #tpu.memory_space<any>> -> memref<1x2048xf32, #tpu.memory_space<any>>
    %6 = tpu.memref_slice %arg2[%c0_i32_4] : memref<1x!tpu.dma_semaphore, #tpu.memory_space<semaphore_mem>> -> memref<1x!tpu.dma_semaphore, #tpu.memory_space<semaphore_mem>>
    %7 = tpu.memref_squeeze %6 : memref<1x!tpu.dma_semaphore, #tpu.memory_space<semaphore_mem>> -> memref<!tpu.dma_semaphore, #tpu.memory_space<semaphore_mem>>
    tpu.wait_dma2 semaphore(%7 : memref<!tpu.dma_semaphore, #tpu.memory_space<semaphore_mem>>) src(%4 : memref<1x2048xf32, #tpu.memory_space<any>>) dst(%5 : memref<1x2048xf32, #tpu.memory_space<any>>)
    return
  }
}

</mosaic_0001>

<bundles_post_ra>
// kernel: _reshape_copy.1
= control target key start
LH: loop header
LB: loop body
LE: loop exit
PB: predicated region body
PF: predicated region fallthrough
CT: control target
= control target key end

     0   :  { %s64_s0 = inlined_call_operand.vmem [shape: f32[1,2048], index: 0, kind: input, shape index: {}]   ;;  %s65_s1 = inlined_call_operand.vmem [shape: f32[1,2048], index: 1, kind: output, shape index: {}]  }
   0x1   :  { %v16_v0 = vld [vmem:[%s64_s0] sm:$0xff]  ;;  %v18_v1 = vld [vmem:[%s64_s0 + $0x8] sm:$0xff] }
   0x2   :  { %17 = vst [vmem:[%s65_s1] sm:$0xff] %v16_v0 }
   0x3   :  { %19 = vst [vmem:[%s65_s1 + $0x8] sm:$0xff] %v18_v1 }
   0x4   :  { %25 = vsyncadd [#allocation2], 256 }
   0x5   :  { %40 = dma.done.wait [#allocation2], 256 }
   0x6   :  { %41 = vsyncadd [#allocation2], 4294967040 }
   0x7   :  { %29 = vsyncmov [#allocation2] }
   0xa   :  { %s30_s14 = vpop.sfrf %29 }
   0xb   :  { %p39_p0 = scmp.ne.s32.totalorder %s30_s14, 0 }
   0xd   :  { %34 = shalt.err (%p39_p0)  }

</bundles_post_ra>
